<compile_context>
chip_gen: v7x
topology: tpu7x:2x2x1
jax: 0.10.0
libtpu: 0.0.40
codegen_flags: <defaults>
</compile_context>

<pallas_src>
import functools

import jax
import jax.numpy as jnp
from jax.experimental import pallas as pl
from jax.experimental.pallas import tpu as pltpu

EPS = 1e-5
ACT_DTYPE = jnp.bfloat16       # activations / weights fed to the MXU
PARAM_DTYPE = jnp.float32      # BN scale/bias and accumulation dtype
VMEM_LIMIT = 48 * 1024 * 1024  # under v7x's 64 MiB physical VMEM


def _round_up(x, m):
    return ((x + m - 1) // m) * m


# ----------------------------------------------------------------------------
# Pallas kernels
# ----------------------------------------------------------------------------
def _mm_bn_kernel(relu, has_res, x_ref, w_ref, s_ref, b_ref, *rest):
    """acc += x @ w over the K grid axis; epilogue: *scale + bias [+res] [relu]."""
    if has_res:
        r_ref, o_ref, acc_ref = rest
    else:
        o_ref, acc_ref = rest
    k = pl.program_id(2)

    @pl.when(k == 0)
    def _():
        acc_ref[...] = jnp.zeros_like(acc_ref)

    acc_ref[...] += jnp.dot(x_ref[...], w_ref[...],
                            preferred_element_type=jnp.float32)

    @pl.when(k == pl.num_programs(2) - 1)
    def _():
        acc = acc_ref[...] * s_ref[...] + b_ref[...]     # f32 epilogue
        if has_res:
            acc = acc + r_ref[...].astype(jnp.float32)
        if relu:
            acc = jnp.maximum(acc, 0.0)
        o_ref[...] = acc.astype(o_ref.dtype)


def _max9_kernel(t0, t1, t2, t3, t4, t5, t6, t7, t8, o_ref):
    # Running max over the 9 pooling taps (no stacked 9x tensor in HBM/VMEM).
    m = jnp.maximum(t0[...], t1[...])
    m = jnp.maximum(m, t2[...])
    m = jnp.maximum(m, t3[...])
    m = jnp.maximum(m, t4[...])
    m = jnp.maximum(m, t5[...])
    m = jnp.maximum(m, t6[...])
    m = jnp.maximum(m, t7[...])
    m = jnp.maximum(m, t8[...])
    o_ref[...] = m


def _gap_kernel(inv_hw, x_ref, o_ref, acc_ref):
    # Accumulating global average pool over tiles of the H*W axis.
    j = pl.program_id(0)

    @pl.when(j == 0)
    def _():
        acc_ref[...] = jnp.zeros_like(acc_ref)

    acc_ref[...] += jnp.sum(x_ref[...].astype(jnp.float32), axis=1)

    @pl.when(j == pl.num_programs(0) - 1)
    def _():
        o_ref[...] = acc_ref[...] * inv_hw


# ----------------------------------------------------------------------------
# Cached pallas_call builders (one compile per distinct shape signature)
# ----------------------------------------------------------------------------
@functools.lru_cache(maxsize=None)
def _get_matmul_bn_call(Mp, Kp, Np, tm, tk, tn, relu, has_res):
    grid = (Mp // tm, Np // tn, Kp // tk)
    in_specs = [
        pl.BlockSpec((tm, tk), lambda i, j, k: (i, k)),
        pl.BlockSpec((tk, tn), lambda i, j, k: (k, j)),
        pl.BlockSpec((1, tn), lambda i, j, k: (0, j)),
        pl.BlockSpec((1, tn), lambda i, j, k: (0, j)),
    ]
    if has_res:
        in_specs.append(pl.BlockSpec((tm, tn), lambda i, j, k: (i, j)))

    flops = 2 * Mp * Kp * Np
    bytes_accessed = (Mp * Kp + Kp * Np + Mp * Np * (2 if has_res else 1)) * 2 \
        + 2 * Np * 4

    return pl.pallas_call(
        functools.partial(_mm_bn_kernel, relu, has_res),
        grid=grid,
        in_specs=in_specs,
        out_specs=pl.BlockSpec((tm, tn), lambda i, j, k: (i, j)),
        out_shape=jax.ShapeDtypeStruct((Mp, Np), ACT_DTYPE),
        scratch_shapes=[pltpu.VMEM((tm, tn), jnp.float32)],
        compiler_params=pltpu.CompilerParams(
            dimension_semantics=("parallel", "parallel", "arbitrary"),
            vmem_limit_bytes=VMEM_LIMIT,
        ),
        cost_estimate=pl.CostEstimate(flops=flops, transcendentals=0,
                                      bytes_accessed=bytes_accessed),
    )


@functools.lru_cache(maxsize=None)
def _get_maxpool_call(Mp, C, tm):
    grid = (Mp // tm,)
    in_specs = [pl.BlockSpec((tm, C), lambda i: (i, 0)) for _ in range(9)]
    return pl.pallas_call(
        _max9_kernel,
        grid=grid,
        in_specs=in_specs,
        out_specs=pl.BlockSpec((tm, C), lambda i: (i, 0)),
        out_shape=jax.ShapeDtypeStruct((Mp, C), ACT_DTYPE),
        compiler_params=pltpu.CompilerParams(
            dimension_semantics=("parallel",),
            vmem_limit_bytes=VMEM_LIMIT,
        ),
    )


@functools.lru_cache(maxsize=None)
def _get_gap_call(N, HWp, C, t, inv_hw):
    grid = (HWp // t,)
    return pl.pallas_call(
        functools.partial(_gap_kernel, inv_hw),
        grid=grid,
        in_specs=[pl.BlockSpec((N, t, C), lambda j: (0, j, 0))],
        out_specs=pl.BlockSpec((N, C), lambda j: (0, 0)),
        out_shape=jax.ShapeDtypeStruct((N, C), jnp.float32),
        scratch_shapes=[pltpu.VMEM((N, C), jnp.float32)],
        compiler_params=pltpu.CompilerParams(
            dimension_semantics=("arbitrary",),
            vmem_limit_bytes=VMEM_LIMIT,
        ),
    )


# ----------------------------------------------------------------------------
# Op wrappers
# ----------------------------------------------------------------------------
def matmul_bn(x2d, w, scale, bias, residual=None, relu=True):
    """Fused (x2d @ w) * scale + bias [+ residual] [relu] on the MXU (bf16 in, f32 acc)."""
    M, K = x2d.shape
    _, N = w.shape

    # --- tile selection (keeps VMEM bounded; M/N padded instead of full-M fallback) ---
    if M >= 256:
        tm = 256
        Mp = _round_up(M, tm)
    else:
        Mp = _round_up(M, 8)
        tm = Mp
    tn = N if N <= 256 else 256
    Np = _round_up(N, tn)
    if K <= 768:
        Kp = K
        tk = K
    else:
        Kp = _round_up(K, 128)
        tk = 128
        for t in (512, 384, 256, 128):
            if Kp % t == 0:
                tk = t
                break

    xb = x2d.astype(ACT_DTYPE)
    wb = w.astype(ACT_DTYPE)
    if (Mp, Kp) != (M, K):
        xb = jnp.pad(xb, ((0, Mp - M), (0, Kp - K)))
    if (Kp, Np) != (K, N):
        wb = jnp.pad(wb, ((0, Kp - K), (0, Np - N)))
    s = scale.reshape(1, N).astype(PARAM_DTYPE)
    b = bias.reshape(1, N).astype(PARAM_DTYPE)
    if Np != N:
        s = jnp.pad(s, ((0, 0), (0, Np - N)))
        b = jnp.pad(b, ((0, 0), (0, Np - N)))

    args = [xb, wb, s, b]
    if residual is not None:
        r = residual.reshape(M, N).astype(ACT_DTYPE)
        if (Mp, Np) != (M, N):
            r = jnp.pad(r, ((0, Mp - M), (0, Np - N)))
        args.append(r)

    fn = _get_matmul_bn_call(Mp, Kp, Np, tm, tk, tn, bool(relu),
                             residual is not None)
    out = fn(*args)
    if (Mp, Np) != (M, N):
        out = out[:M, :N]
    return out


def conv_bn(x, w, bn, stride, padding, relu=True, residual=None):
    """conv2d (no bias, PyTorch OIHW weights) + folded BatchNorm (+res+relu), NHWC."""
    scale, bias = bn
    N, H, W, Cin = x.shape
    Cout, _, kh, kw = w.shape
    Ho = (H + 2 * padding - kh) // stride + 1
    Wo = (W + 2 * padding - kw) // stride + 1

    if kh == 1 and kw == 1 and padding == 0:
        xs = x[:, ::stride, ::stride, :] if stride > 1 else x
        xcol = xs.reshape(N * Ho * Wo, Cin)
    else:
        # TODO(synk): fold the kxk im2col taps into an in-kernel K-reduction that
        # index-maps directly into the padded NHWC tensor, to avoid the kxk-expanded
        # HBM round-trip on the 3x3 / 7x7 convolutions.
        xp = x
        if padding > 0:
            xp = jnp.pad(x, ((0, 0), (padding, padding), (padding, padding), (0, 0)))
        patches = []
        for i in range(kh):
            for j in range(kw):
                patches.append(
                    xp[:, i: i + (Ho - 1) * stride + 1: stride,
                          j: j + (Wo - 1) * stride + 1: stride, :]
                )
        xcol = jnp.concatenate(patches, axis=-1).reshape(N * Ho * Wo, kh * kw * Cin)

    wmat = jnp.transpose(w, (2, 3, 1, 0)).reshape(kh * kw * Cin, Cout)
    out = matmul_bn(xcol, wmat, scale, bias, residual=residual, relu=relu)
    return out.reshape(N, Ho, Wo, Cout)


def max_pool_3x3_s2_p1(x):
    """MaxPool2d(kernel_size=3, stride=2, padding=1), NHWC, tiled over rows."""
    N, H, W, C = x.shape
    Ho = (H + 2 - 3) // 2 + 1
    Wo = (W + 2 - 3) // 2 + 1
    M = N * Ho * Wo
    xp = jnp.pad(x, ((0, 0), (1, 1), (1, 1), (0, 0)), constant_values=-jnp.inf)
    taps = []
    for i in range(3):
        for j in range(3):
            taps.append(
                xp[:, i: i + (Ho - 1) * 2 + 1: 2,
                      j: j + (Wo - 1) * 2 + 1: 2, :].reshape(M, C)
            )
    if M >= 512:
        tm = 512
        Mp = _round_up(M, tm)
    else:
        Mp = _round_up(M, 8)
        tm = Mp
    if Mp != M:
        taps = [jnp.pad(t, ((0, Mp - M), (0, 0))) for t in taps]
    out = _get_maxpool_call(Mp, C, tm)(*taps)
    if Mp != M:
        out = out[:M]
    return out.reshape(N, Ho, Wo, C)


def global_avg_pool(x):
    """AdaptiveAvgPool2d((1,1)) + flatten, NHWC -> (N, C), accumulated over HW tiles."""
    N, H, W, C = x.shape
    HW = H * W
    xr = x.reshape(N, HW, C)
    if HW >= 512:
        t = 512
        HWp = _round_up(HW, t)
    else:
        HWp = _round_up(HW, 8)
        t = HWp
    if HWp != HW:
        xr = jnp.pad(xr, ((0, 0), (0, HWp - HW), (0, 0)))  # zero pad; divide by true HW
    return _get_gap_call(N, HWp, C, t, 1.0 / HW)(xr)


# ----------------------------------------------------------------------------
# Parameter construction (deterministic, synthetic — no checkpoint load)
# ----------------------------------------------------------------------------
class _KeyGen:
    def __init__(self, key):
        self._key = key

    def __call__(self):
        self._key, sub = jax.random.split(self._key)
        return sub


def _init_conv(kg, cout, cin, kh, kw):
    fan_in = cin * kh * kw
    w = jax.random.normal(kg(), (cout, cin, kh, kw), jnp.float32)
    return (w * jnp.sqrt(2.0 / fan_in)).astype(ACT_DTYPE)


def _init_bn(c):
    # BatchNorm (inference) folded into scale/bias:
    #   scale = gamma / sqrt(var + eps), bias = beta - mean * scale
    gamma = jnp.ones((c,), PARAM_DTYPE)
    beta = jnp.zeros((c,), PARAM_DTYPE)
    mean = jnp.zeros((c,), PARAM_DTYPE)
    var = jnp.ones((c,), PARAM_DTYPE)
    scale = gamma / jnp.sqrt(var + EPS)
    bias = beta - mean * scale
    return (scale, bias)


def make_resnet152_params(key):
    kg = _KeyGen(key)
    params = {
        "conv1_w": _init_conv(kg, 64, 3, 7, 7),
        "bn1": _init_bn(64),
        "layers": [],
    }
    # torchvision resnet152: Bottleneck blocks [3, 8, 36, 3], expansion 4
    layer_cfg = [(64, 3, 1), (128, 8, 2), (256, 36, 2), (512, 3, 2)]
    inplanes = 64
    for planes, nblocks, stride in layer_cfg:
        blocks = []
        for b in range(nblocks):
            s = stride if b == 0 else 1
            blk = {
                "w1": _init_conv(kg, planes, inplanes, 1, 1), "bn1": _init_bn(planes),
                "w2": _init_conv(kg, planes, planes, 3, 3),   "bn2": _init_bn(planes),
                "w3": _init_conv(kg, planes * 4, planes, 1, 1), "bn3": _init_bn(planes * 4),
                "stride": s,
            }
            if s != 1 or inplanes != planes * 4:
                blk["ds_w"] = _init_conv(kg, planes * 4, inplanes, 1, 1)
                blk["ds_bn"] = _init_bn(planes * 4)
            blocks.append(blk)
            inplanes = planes * 4
        params["layers"].append(blocks)
    return params


# ----------------------------------------------------------------------------
# Forward pass (matches Resnet152Fc.forward)
# ----------------------------------------------------------------------------
def bottleneck(x, blk):
    out = conv_bn(x, blk["w1"], blk["bn1"], stride=1, padding=0, relu=True)
    out = conv_bn(out, blk["w2"], blk["bn2"], stride=blk["stride"], padding=1, relu=True)
    if "ds_w" in blk:
        identity = conv_bn(x, blk["ds_w"], blk["ds_bn"], stride=blk["stride"],
                           padding=0, relu=False)
    else:
        identity = x
    # conv3 + bn3 + residual add + relu fused into one Pallas kernel
    out = conv_bn(out, blk["w3"], blk["bn3"], stride=1, padding=0,
                  relu=True, residual=identity)
    return out


def resnet152_fc_forward(params, x_nchw):
    x = jnp.transpose(x_nchw, (0, 2, 3, 1)).astype(ACT_DTYPE)  # NCHW -> NHWC
    x = conv_bn(x, params["conv1_w"], params["bn1"], stride=2, padding=3, relu=True)
    x = max_pool_3x3_s2_p1(x)
    for blocks in params["layers"]:
        for blk in blocks:
            x = bottleneck(x, blk)
    x = global_avg_pool(x)  # (N, 2048) == x.view(x.size(0), -1)
    return x


# ----------------------------------------------------------------------------
if __name__ == "__main__":
    key = jax.random.PRNGKey(0)
    pkey, xkey = jax.random.split(key)

    params = make_resnet152_params(pkey)
    # Small spatial size (forward implies NCHW images with 3 channels).
    x = jax.random.normal(xkey, (2, 3, 32, 32), jnp.float32)

    out = resnet152_fc_forward(params, x)
    out = jax.block_until_ready(out)

    assert out.shape == (2, 2048), out.shape          # fc.in_features == 2048
    assert bool(jnp.all(jnp.isfinite(out)))
    print("KERNEL_OK")
</pallas_src>

<mosaic_0001>
module attributes {stable_mosaic.version = 11 : i64} {
  func.func @_mm_bn_kernel(%arg0: i32, %arg1: i32, %arg2: i32, %arg3: memref<256x147xbf16, #tpu.memory_space<vmem>>, %arg4: memref<147x64xbf16, #tpu.memory_space<vmem>>, %arg5: memref<1x64xf32, #tpu.memory_space<vmem>>, %arg6: memref<1x64xf32, #tpu.memory_space<vmem>>, %arg7: memref<256x64xbf16, #tpu.memory_space<vmem>>, %arg8: memref<256x64xf32, #tpu.memory_space<vmem>>) attributes {dimension_semantics = [#tpu.dimension_semantics<parallel>, #tpu.dimension_semantics<parallel>, #tpu.dimension_semantics<arbitrary>], iteration_bounds = array<i64: 2, 1, 1>, scalar_prefetch = 0 : i64, scratch_operands = 1 : i64, tpu.core_type = #tpu.core_type<tc>, window_params = [{transform_indices = @transform_0, window_bounds = array<i64: 256, 147>}, {transform_indices = @transform_1, window_bounds = array<i64: 147, 64>}, {transform_indices = @transform_2, window_bounds = array<i64: 1, 64>}, {transform_indices = @transform_3, window_bounds = array<i64: 1, 64>}, {transform_indices = @transform_4, window_bounds = array<i64: 256, 64>}]} {
    %c0_i32 = arith.constant 0 : i32
    %0 = arith.cmpi eq, %arg2, %c0_i32 : i32
    %1 = arith.extui %0 : i1 to i32
    %c0_i32_0 = arith.constant 0 : i32
    %2 = arith.cmpi ne, %1, %c0_i32_0 : i32
    scf.if %2 {
      %cst_10 = arith.constant 0.000000e+00 : f32
      %12 = vector.broadcast %cst_10 : f32 to vector<256x64xf32>
      %c0_11 = arith.constant 0 : index
      %c0_12 = arith.constant 0 : index
      %13 = vector.load %arg8[%c0_11, %c0_12] : memref<256x64xf32, #tpu.memory_space<vmem>>, vector<256x64xf32>
      tpu.vector_store %arg8[%c0_11, %c0_12], %12 {strides = array<i32>} : memref<256x64xf32, #tpu.memory_space<vmem>>, vector<256x64xf32>,
    } else {
    }
    %c0 = arith.constant 0 : index
    %c0_1 = arith.constant 0 : index
    %3 = vector.load %arg8[%c0, %c0_1] : memref<256x64xf32, #tpu.memory_space<vmem>>, vector<256x64xf32>
    %c0_2 = arith.constant 0 : index
    %c0_3 = arith.constant 0 : index
    %4 = vector.load %arg3[%c0_2, %c0_3] : memref<256x147xbf16, #tpu.memory_space<vmem>>, vector<256x147xbf16>
    %c0_4 = arith.constant 0 : index
    %c0_5 = arith.constant 0 : index
    %5 = vector.load %arg4[%c0_4, %c0_5] : memref<147x64xbf16, #tpu.memory_space<vmem>>, vector<147x64xbf16>
    %cst = arith.constant dense<0.000000e+00> : vector<256x64xf32>
    %6 = tpu.matmul %4, %5, %cst {dimension_numbers = #tpu.dot_dimension_numbers<[1], [0], [0], [1], [0, 0, 1, 1], [], []>} : vector<256x147xbf16>, vector<147x64xbf16>, vector<256x64xf32> -> vector<256x64xf32>
    %7 = arith.addf %3, %6 : vector<256x64xf32>
    %c0_6 = arith.constant 0 : index
    %c0_7 = arith.constant 0 : index
    %8 = vector.load %arg8[%c0_6, %c0_7] : memref<256x64xf32, #tpu.memory_space<vmem>>, vector<256x64xf32>
    tpu.vector_store %arg8[%c0_6, %c0_7], %7 {strides = array<i32>} : memref<256x64xf32, #tpu.memory_space<vmem>>, vector<256x64xf32>,
    %c0_i32_8 = arith.constant 0 : i32
    %9 = arith.cmpi eq, %arg2, %c0_i32_8 : i32
    %10 = arith.extui %9 : i1 to i32
    %c0_i32_9 = arith.constant 0 : i32
    %11 = arith.cmpi ne, %10, %c0_i32_9 : i32
    scf.if %11 {
      %c0_10 = arith.constant 0 : index
      %c0_11 = arith.constant 0 : index
      %12 = vector.load %arg8[%c0_10, %c0_11] : memref<256x64xf32, #tpu.memory_space<vmem>>, vector<256x64xf32>
      %c0_12 = arith.constant 0 : index
      %c0_13 = arith.constant 0 : index
      %13 = vector.load %arg5[%c0_12, %c0_13] : memref<1x64xf32, #tpu.memory_space<vmem>>, vector<1x64xf32>
      %14 = vector.broadcast %13 : vector<1x64xf32> to vector<256x64xf32>
      %15 = arith.mulf %12, %14 : vector<256x64xf32>
      %c0_14 = arith.constant 0 : index
      %c0_15 = arith.constant 0 : index
      %16 = vector.load %arg6[%c0_14, %c0_15] : memref<1x64xf32, #tpu.memory_space<vmem>>, vector<1x64xf32>
      %17 = vector.broadcast %16 : vector<1x64xf32> to vector<256x64xf32>
      %18 = arith.addf %15, %17 : vector<256x64xf32>
      %cst_16 = arith.constant 0.000000e+00 : f32
      %19 = vector.broadcast %cst_16 : f32 to vector<256x64xf32>
      %20 = arith.maximumf %18, %19 : vector<256x64xf32>
      %21 = arith.truncf %20 : vector<256x64xf32> to vector<256x64xbf16>
      %c0_17 = arith.constant 0 : index
      %c0_18 = arith.constant 0 : index
      %22 = vector.load %arg7[%c0_17, %c0_18] : memref<256x64xbf16, #tpu.memory_space<vmem>>, vector<256x64xbf16>
      tpu.vector_store %arg7[%c0_17, %c0_18], %21 {strides = array<i32>} : memref<256x64xbf16, #tpu.memory_space<vmem>>, vector<256x64xbf16>,
    } else {
    }
    return
  }
  func.func @transform_0(%arg0: i32, %arg1: i32, %arg2: i32) -> (i32, i32) {
    %c0_i32 = arith.constant 0 : i32
    return %arg0, %arg2 : i32, i32
  }
  func.func @transform_1(%arg0: i32, %arg1: i32, %arg2: i32) -> (i32, i32) {
    %c0_i32 = arith.constant 0 : i32
    return %arg2, %arg1 : i32, i32
  }
  func.func @transform_2(%arg0: i32, %arg1: i32, %arg2: i32) -> (i32, i32) {
    %c0_i32 = arith.constant 0 : i32
    %c0_i32_0 = arith.constant 0 : i32
    return %c0_i32, %arg1 : i32, i32
  }
  func.func @transform_3(%arg0: i32, %arg1: i32, %arg2: i32) -> (i32, i32) {
    %c0_i32 = arith.constant 0 : i32
    %c0_i32_0 = arith.constant 0 : i32
    return %c0_i32, %arg1 : i32, i32
  }
  func.func @transform_4(%arg0: i32, %arg1: i32, %arg2: i32) -> (i32, i32) {
    %c0_i32 = arith.constant 0 : i32
    return %arg0, %arg1 : i32, i32
  }
}

</mosaic_0001>

<bundles_post_ra>
// kernel: tpu_custom_call.1
= control target key start
LH: loop header
LB: loop body
LE: loop exit
PB: predicated region body
PF: predicated region fallthrough
CT: control target
= control target key end

     0   :  { %s1641_s15 = smov 0   ;;  %s1643_s16 = smov 0   ;;  %s1984_s0 = inlined_call_operand.vmem [shape: bf16[512,147], index: 0, kind: input, shape index: {}]   ;;  %s1985_s1 = inlined_call_operand.vmem [shape: bf16[147,64], index: 1, kind: input, shape index: {}]   ;;  %s1986_s2 = inlined_call_operand.vmem [shape: f32[1,64], index: 2, kind: input, shape index: {}]   ;;  %s1987_s3 = inlined_call_operand.vmem [shape: f32[1,64], index: 3, kind: input, shape index: {}]   ;;  %s1988_s4 = inlined_call_operand.vmem [shape: bf16[512,64], index: 4, kind: output, shape index: {}]  }
   0x1   :  { %s1645_s17 = smov 0  }
   0x2 LB: > { %s33_s18 = sadd.s32 1, %s1607_s16  ;;  %p1351_p0 = scmp.ge.s32.totalorder %s1611_s17, 1  ;;  %s1611_s17 = sphi %s1645_s17, %s14_s17   ;;  %s1607_s16 = sphi %s1643_s16, %s1990_s16   ;;  %s1603_s15 = sphi %s1641_s15, %s1989_s15  }
   0x3   : > { %p35_p1 = scmp.ge.s32.totalorder %s33_s18, 2  ;;  %p224_p2 = scmp.lt.s32.totalorder %s1611_s17, 3 }
   0x5   : > { %s1992_s18 = smov (%p35_p1, %s33_s18), 0  ;;  %p225_p3 = pnand %p1351_p0, %p224_p2 }
   0x6   : > { %v1531_v0 = vld [vmem:[%s1985_s1] sm:$0xff] (!%p225_p3)   ;;  %v1613_v1 = vmov (!%p225_p3), 0   ;;  %v1532_v2 = vld [vmem:[%s1985_s1 + $0x8] sm:$0xff] (!%p225_p3)   ;;  %v1533_v3 = vld [vmem:[%s1985_s1 + $0x10] sm:$0xff] (!%p225_p3)   ;;  %s1352_s25 = sshll.u32 (!%p225_p3), %s1603_s15, 5  ;;  %vm313_vm0 = vcmask (!%p225_p3), 523264  }
   0x7   : > { %228 = sbr.rel (%p225_p3) target bundleno = 338 (0x152), region = 36  ;;  %686 = vmatprep.subr.bf16.mxu0 (!%p225_p3), %v1613_v1  ;;  %1484 = vmatprep.subr.bf16.mxu1 (!%p225_p3), %v1613_v1  ;;  %p274_p4 = scmp.lt.s32.totalorder (!%p225_p3), %s1352_s25, 63  ;;  %v1534_v4 = vld [vmem:[%s1985_s1 + $0x18] sm:$0xff] (!%p225_p3)   ;;  %v1614_v5 = vmov (!%p225_p3), 0.0   ;;  %v1535_v6 = vld [vmem:[%s1985_s1 + $0x20] sm:$0xff] (!%p225_p3)   ;;  %vm630_vm1 = vcmask (!%p225_p3), 154624  }
   0x8   : > { %687 = vmatpush1.bf16.msra.mxu0 (!%p225_p3), %v1531_v0  ;;  %1494 = vmatpush1.bf16.msra.mxu1 (!%p225_p3), %v1531_v0  ;;  %314 = vst.msk [vmem:[#allocation2] sm:$0xff] (!%p225_p3), %vm313_vm0, %v1614_v5  ;;  %315 = vst.msk [vmem:[#allocation2 + $0x8] sm:$0xff] (!%p225_p3), %vm313_vm0, %v1614_v5  ;;  %v1536_v9 = vld [vmem:[%s1985_s1 + $0x28] sm:$0xff] (!%p225_p3)   ;;  %v1537_v10 = vld [vmem:[%s1985_s1 + $0x30] sm:$0xff] (!%p225_p3)   ;;  %vm679_vm2 = vcmask (!%p225_p3), 1040384   ;;  %vm680_vm3 = vcmask (!%p225_p3), 1041408  }
   0x9   : > { %688 = vmatprep.subr.bf16.mxu0 (!%p225_p3), %v1613_v1  ;;  %1485 = vmatprep.subr.bf16.mxu1 (!%p225_p3), %v1613_v1  ;;  %316 = vst.msk [vmem:[#allocation2 + $0x10] sm:$0xff] (!%p225_p3), %vm313_vm0, %v1614_v5  ;;  %317 = vst.msk [vmem:[#allocation2 + $0x18] sm:$0xff] (!%p225_p3), %vm313_vm0, %v1614_v5  ;;  %v1538_v11 = vld [vmem:[%s1985_s1 + $0x38] sm:$0xff] (!%p225_p3)   ;;  %v1615_v12 = vmov (!%p225_p3), 65535   ;;  %v1539_v14 = vld [vmem:[%s1985_s1 + $0x40] sm:$0xff] (!%p225_p3)   ;;  %vm1185_vm4 = vcmask (!%p225_p3), 519168  }
   0xa   : > { %318 = vst.msk [vmem:[#allocation2 + $0x20] sm:$0xff] (!%p225_p3), %vm313_vm0, %v1614_v5  ;;  %319 = vst.msk [vmem:[#allocation2 + $0x28] sm:$0xff] (!%p225_p3), %vm313_vm0, %v1614_v5  ;;  %v681_v13 = vsel (!%p225_p3), %vm679_vm2, 4294967295, %v1615_v12  ;;  %v1540_v15 = vld [vmem:[%s1985_s1 + $0x48] ss:$0 sps:$4 sm:$0x33] (!%p225_p3)  }
   0xb   : > { %320 = vst.msk [vmem:[#allocation2 + $0x30] sm:$0xff] (!%p225_p3), %vm313_vm0, %v1614_v5  ;;  %321 = vst.msk [vmem:[#allocation2 + $0x38] sm:$0xff] (!%p225_p3), %vm313_vm0, %v1614_v5  ;;  %v682_v16 = vsel (!%p225_p3), %vm680_vm3, %v681_v13, 0  ;;  %v1811_v12 = vld [vmem:[%s1987_s3] ss:$0 sm:$0xff] (!%p225_p3) }
   0xc   : > { %689 = vmatpush1.bf16.msra.mxu0 (!%p225_p3), %v1532_v2  ;;  %1495 = vmatpush1.bf16.msra.mxu1 (!%p225_p3), %v1532_v2  ;;  %322 = vst.msk [vmem:[#allocation2 + $0x40] sm:$0xff] (!%p225_p3), %vm313_vm0, %v1614_v5  ;;  %323 = vst.msk [vmem:[#allocation2 + $0x48] sm:$0xff] (!%p225_p3), %vm313_vm0, %v1614_v5  ;;  %v684_v17 = vand.u32 (!%p225_p3), %v1540_v15, %v682_v16  ;;  %v1806_v2 = vld [vmem:[%s1986_s2] ss:$0 sm:$0xff] (!%p225_p3) }
   0xd   : > { %690 = vmatprep.subr.bf16.mxu0 (!%p225_p3), %v1613_v1  ;;  %1486 = vmatprep.subr.bf16.mxu1 (!%p225_p3), %v1613_v1  ;;  %324 = vst.msk [vmem:[#allocation2 + $0x50] sm:$0xff] (!%p225_p3), %vm313_vm0, %v1614_v5  ;;  %325 = vst.msk [vmem:[#allocation2 + $0x58] sm:$0xff] (!%p225_p3), %vm313_vm0, %v1614_v5 }
   0xe   : > { %s1994_s25 = smov (!%p274_p4, %s1352_s25), 63  ;;  %326 = vst.msk [vmem:[#allocation2 + $0x60] sm:$0xff] %vm313_vm0, %v1614_v5  ;;  %327 = vst.msk [vmem:[#allocation2 + $0x68] sm:$0xff] %vm313_vm0, %v1614_v5 }
   0xf   : > { %s1451_s28 = sshll.u32 %s1994_s25, 3  ;;  %328 = vst.msk [vmem:[#allocation2 + $0x70] sm:$0xff] %vm313_vm0, %v1614_v5  ;;  %329 = vst.msk [vmem:[#allocation2 + $0x78] sm:$0xff] %vm313_vm0, %v1614_v5  ;;  %v346_v48 = vld [vmem:[#allocation2] sm:$0xff]  ;;  %v347_v52 = vld [vmem:[#allocation2 + $0x8] sm:$0xff]  ;;  %s1356_s26 = sshll.u32 %s1994_s25, 2 }
  0x10   : > { %691 = vmatpush1.bf16.msra.mxu0 %v1533_v3  ;;  %1496 = vmatpush1.bf16.msra.mxu1 %v1533_v3  ;;  %330 = vst.msk [vmem:[#allocation2 + $0x80] sm:$0xff] %vm313_vm0, %v1614_v5  ;;  %331 = vst.msk [vmem:[#allocation2 + $0x88] sm:$0xff] %vm313_vm0, %v1614_v5  ;;  %s1719_s5 = scalar_lea.vmem %s1984_s0, %s1451_s28  ;;  %v348_v0 = vld [vmem:[#allocation2 + $0x10] sm:$0xff]  ;;  %s1829_s28 = scalar_lea.vmem %s1988_s4, %s1356_s26 }
  0x11   : > { %692 = vmatprep.subr.bf16.mxu0 %v1613_v1  ;;  %1487 = vmatprep.subr.bf16.mxu1 %v1613_v1  ;;  %332 = vst.msk [vmem:[#allocation2 + $0x90] sm:$0xff] %vm313_vm0, %v1614_v5  ;;  %333 = vst.msk [vmem:[#allocation2 + $0x98] sm:$0xff] %vm313_vm0, %v1614_v5  ;;  %v1543_v7 = vld [vmem:[%s1719_s5 + $0x4] ss:$8 sps:$4 sm:$0xff]   ;;  %v1541_v18 = vld [vmem:[%s1719_s5] ss:$8 sps:$4 sm:$0xff]  }
  0x12   : > { %334 = vst.msk [vmem:[#allocation2 + $0xa0] sm:$0xff] %vm313_vm0, %v1614_v5  ;;  %335 = vst.msk [vmem:[#allocation2 + $0xa8] sm:$0xff] %vm313_vm0, %v1614_v5  ;;  %v1546_v8 = vld [vmem:[%s1719_s5 + $0x84] ss:$8 sps:$4 sm:$0xff]   ;;  %1399 = vmatprep.mubr.msk.bf16.mxu0 %vm630_vm1, %v1543_v7  ;;  %v1544_v19 = vld [vmem:[%s1719_s5 + $0x80] ss:$8 sps:$4 sm:$0xff]  }
  0x13   : > { %336 = vst.msk [vmem:[#allocation2 + $0xb0] sm:$0xff] %vm313_vm0, %v1614_v5  ;;  %337 = vst.msk [vmem:[#allocation2 + $0xb8] sm:$0xff] %vm313_vm0, %v1614_v5  ;;  %1407 = vmatprep.mubr.msk.bf16.mxu1 %vm630_vm1, %v1546_v8  ;;  %v1547_v20 = vld [vmem:[%s1719_s5 + $0x14] ss:$8 sps:$4 sm:$0xff]   ;;  %v1551_v22 = vld [vmem:[%s1719_s5 + $0x10] ss:$8 sps:$4 sm:$0xff]  }
  0x14   : > { %338 = vst.msk [vmem:[#allocation2 + $0xc0] sm:$0xff] %vm313_vm0, %v1614_v5  ;;  %339 = vst.msk [vmem:[#allocation2 + $0xc8] sm:$0xff] %vm313_vm0, %v1614_v5  ;;  %693 = vmatpush1.bf16.msra.mxu0 %v1534_v4  ;;  %1497 = vmatpush1.bf16.msra.mxu1 %v1534_v4  ;;  %v1549_v21 = vld [vmem:[%s1719_s5 + $0x94] ss:$8 sps:$4 sm:$0xff]   ;;  %v1552_v23 = vld [vmem:[%s1719_s5 + $0x90] ss:$8 sps:$4 sm:$0xff]  }
  0x15   : > { %340 = vst.msk [vmem:[#allocation2 + $0xd0] sm:$0xff] %vm313_vm0, %v1614_v5  ;;  %341 = vst.msk [vmem:[#allocation2 + $0xd8] sm:$0xff] %vm313_vm0, %v1614_v5  ;;  %694 = vmatprep.subr.bf16.mxu0 %v1613_v1  ;;  %1488 = vmatprep.subr.bf16.mxu1 %v1613_v1  ;;  %v1553_v24 = vld [vmem:[%s1719_s5 + $0x24] ss:$8 sps:$4 sm:$0xff]   ;;  %v1557_v26 = vld [vmem:[%s1719_s5 + $0x20] ss:$8 sps:$4 sm:$0xff]  }
  0x16   : > { %342 = vst.msk [vmem:[#allocation2 + $0xe0] sm:$0xff] %vm313_vm0, %v1614_v5  ;;  %343 = vst.msk [vmem:[#allocation2 + $0xe8] sm:$0xff] %vm313_vm0, %v1614_v5  ;;  %v1555_v25 = vld [vmem:[%s1719_s5 + $0xa4] ss:$8 sps:$4 sm:$0xff]   ;;  %v1558_v27 = vld [vmem:[%s1719_s5 + $0xa0] ss:$8 sps:$4 sm:$0xff]  }
  0x17   : > { %344 = vst.msk [vmem:[#allocation2 + $0xf0] sm:$0xff] %vm313_vm0, %v1614_v5  ;;  %345 = vst.msk [vmem:[#allocation2 + $0xf8] sm:$0xff] %vm313_vm0, %v1614_v5  ;;  %v1559_v28 = vld [vmem:[%s1719_s5 + $0x34] ss:$8 sps:$4 sm:$0xff]   ;;  %v1563_v30 = vld [vmem:[%s1719_s5 + $0x30] ss:$8 sps:$4 sm:$0xff]  }
  0x18   : > { %695 = vmatpush1.bf16.msra.mxu0 %v1535_v6  ;;  %1498 = vmatpush1.bf16.msra.mxu1 %v1535_v6  ;;  %v1561_v29 = vld [vmem:[%s1719_s5 + $0xb4] ss:$8 sps:$4 sm:$0xff]   ;;  %v1564_v31 = vld [vmem:[%s1719_s5 + $0xb0] ss:$8 sps:$4 sm:$0xff]   ;;  %v1565_v32 = vld [vmem:[%s1719_s5 + $0x44] ss:$8 sps:$4 sm:$0xff]  }
  0x19   : > { %696 = vmatprep.subr.bf16.mxu0 %v1613_v1  ;;  %1489 = vmatprep.subr.bf16.mxu1 %v1613_v1  ;;  %v1567_v33 = vld [vmem:[%s1719_s5 + $0xc4] ss:$8 sps:$4 sm:$0xff]   ;;  %v1569_v34 = vld [vmem:[%s1719_s5 + $0x40] ss:$8 sps:$4 sm:$0xff]   ;;  %v1571_v36 = vld [vmem:[%s1719_s5 + $0x54] ss:$8 sps:$4 sm:$0xff]  }
  0x1a   : > { %v1570_v35 = vld [vmem:[%s1719_s5 + $0xc0] ss:$8 sps:$4 sm:$0xff]   ;;  %v1573_v37 = vld [vmem:[%s1719_s5 + $0xd4] ss:$8 sps:$4 sm:$0xff]   ;;  %v1575_v38 = vld [vmem:[%s1719_s5 + $0x50] ss:$8 sps:$4 sm:$0xff]  }
  0x1b   : > { %v1576_v39 = vld [vmem:[%s1719_s5 + $0xd0] ss:$8 sps:$4 sm:$0xff]   ;;  %v1577_v40 = vld [vmem:[%s1719_s5 + $0x64] ss:$8 sps:$4 sm:$0xff]   ;;  %v1581_v42 = vld [vmem:[%s1719_s5 + $0x60] ss:$8 sps:$4 sm:$0xff]  }
  0x1c   : > { %697 = vmatpush1.bf16.msra.mxu0 %v1536_v9  ;;  %1499 = vmatpush1.bf16.msra.mxu1 %v1536_v9  ;;  %v1579_v41 = vld [vmem:[%s1719_s5 + $0xe4] ss:$8 sps:$4 sm:$0xff]   ;;  %v1582_v43 = vld [vmem:[%s1719_s5 + $0xe0] ss:$8 sps:$4 sm:$0xff]   ;;  %v1583_v44 = vld [vmem:[%s1719_s5 + $0x74] ss:$8 sps:$4 sm:$0xff]  }
  0x1d   : > { %698 = vmatprep.subr.bf16.mxu0 %v1613_v1  ;;  %1490 = vmatprep.subr.bf16.mxu1 %v1613_v1  ;;  %v1585_v45 = vld [vmem:[%s1719_s5 + $0xf4] ss:$8 sps:$4 sm:$0xff]   ;;  %v1587_v46 = vld [vmem:[%s1719_s5 + $0x70] ss:$8 sps:$4 sm:$0xff]   ;;  %v362_v49 = vld [vmem:[#allocation2 + $0x80] sm:$0xff] }
  0x1e   : > { %v1588_v47 = vld [vmem:[%s1719_s5 + $0xf0] ss:$8 sps:$4 sm:$0xff]   ;;  %v363_v53 = vld [vmem:[#allocation2 + $0x88] sm:$0xff] }
  0x1f   : > { %v349_v5 = vld [vmem:[#allocation2 + $0x18] sm:$0xff] }
  0x20   : > { %699 = vmatpush1.bf16.msra.mxu0 %v1537_v10  ;;  %1500 = vmatpush1.bf16.msra.mxu1 %v1537_v10  ;;  %v365_v6 = vld [vmem:[#allocation2 + $0x98] sm:$0xff] }
  0x21   : > { %700 = vmatprep.subr.bf16.mxu0 %v1613_v1  ;;  %1491 = vmatprep.subr.bf16.mxu1 %v1613_v1 }
  0x24   : > { %701 = vmatpush1.bf16.msra.mxu0 %v1538_v11  ;;  %1501 = vmatpush1.bf16.msra.mxu1 %v1538_v11 }
  0x25   : > { %702 = vmatprep.subr.bf16.mxu0 %v1613_v1  ;;  %1492 = vmatprep.subr.bf16.mxu1 %v1613_v1 }
  0x28   : > { %703 = vmatpush1.bf16.msra.mxu0 %v1539_v14  ;;  %1502 = vmatpush1.bf16.msra.mxu1 %v1539_v14 }
  0x29   : > { %704 = vmatprep.subr.bf16.mxu0 %v1613_v1  ;;  %1493 = vmatprep.subr.bf16.mxu1 %v1613_v1  ;;  %v364_v1 = vld [vmem:[#allocation2 + $0x90] sm:$0xff] }
  0x2c   : > { %705 = vmatpush1.bf16.msra.mxu0 %v684_v17  ;;  %1503 = vmatpush1.bf16.msra.mxu1 %v684_v17 }
  0x2f   : > { %719 = vmatmul.mubr.bf16.vlgmr.msra.gmra.mrb[0].mxu0 %v1541_v18  ;;  %783 = vmatmul.mubr.bf16.vlgmr.msra.gmra.mrb[0].mxu1 %v1544_v19 }
  0x30   : > { %1400 = vmatprep.mubr.msk.bf16.mxu0 %vm630_vm1, %v1547_v20  ;;  %1408 = vmatprep.mubr.msk.bf16.mxu1 %vm630_vm1, %v1549_v21 }
  0x37   : > { %727 = vmatmul.mubr.bf16.gmra.mrb[4].mxu0 %v1551_v22  ;;  %791 = vmatmul.mubr.bf16.gmra.mrb[4].mxu1 %v1552_v23 }
  0x38   : > { %1401 = vmatprep.mubr.msk.bf16.mxu0 %vm630_vm1, %v1553_v24  ;;  %1409 = vmatprep.mubr.msk.bf16.mxu1 %vm630_vm1, %v1555_v25 }
  0x3f   : > { %735 = vmatmul.mubr.bf16.gmra.mrb[8].mxu0 %v1557_v26  ;;  %799 = vmatmul.mubr.bf16.gmra.mrb[8].mxu1 %v1558_v27 }
  0x40   : > { %1402 = vmatprep.mubr.msk.bf16.mxu0 %vm630_vm1, %v1559_v28  ;;  %1410 = vmatprep.mubr.msk.bf16.mxu1 %vm630_vm1, %v1561_v29 }
  0x47   : > { %743 = vmatmul.mubr.bf16.gmra.mrb[12].mxu0 %v1563_v30  ;;  %807 = vmatmul.mubr.bf16.gmra.mrb[12].mxu1 %v1564_v31 }
  0x48   : > { %1403 = vmatprep.mubr.msk.bf16.mxu0 %vm630_vm1, %v1565_v32  ;;  %1411 = vmatprep.mubr.msk.bf16.mxu1 %vm630_vm1, %v1567_v33  ;;  %v350_v32 = vld [vmem:[#allocation2 + $0x20] sm:$0xff] }
  0x49   : > { %v366_v33 = vld [vmem:[#allocation2 + $0xa0] sm:$0xff] }
  0x4f   : > { %751 = vmatmul.mubr.bf16.gmra.mrb[16].mxu0 %v1569_v34  ;;  %815 = vmatmul.mubr.bf16.gmra.mrb[16].mxu1 %v1570_v35 }
  0x50   : > { %1404 = vmatprep.mubr.msk.bf16.mxu0 %vm630_vm1, %v1571_v36  ;;  %1412 = vmatprep.mubr.msk.bf16.mxu1 %vm630_vm1, %v1573_v37 }
  0x57   : > { %759 = vmatmul.mubr.bf16.gmra.mrb[20].mxu0 %v1575_v38  ;;  %823 = vmatmul.mubr.bf16.gmra.mrb[20].mxu1 %v1576_v39 }
  0x58   : > { %1405 = vmatprep.mubr.msk.bf16.mxu0 %vm630_vm1, %v1577_v40  ;;  %1413 = vmatprep.mubr.msk.bf16.mxu1 %vm630_vm1, %v1579_v41 }
  0x5f   : > { %767 = vmatmul.mubr.bf16.gmra.mrb[24].mxu0 %v1581_v42  ;;  %831 = vmatmul.mubr.bf16.gmra.mrb[24].mxu1 %v1582_v43  ;;  %v351_v42 = vld [vmem:[#allocation2 + $0x28] sm:$0xff] }
  0x60   : > { %1406 = vmatprep.mubr.msk.bf16.mxu0 %vm630_vm1, %v1583_v44  ;;  %1414 = vmatprep.mubr.msk.bf16.mxu1 %vm630_vm1, %v1585_v45  ;;  %v367_v43 = vld [vmem:[#allocation2 + $0xa8] sm:$0xff] }
  0x67   : > { %775 = vmatmul.mubr.bf16.gmra.mrb[28].mxu0 %v1587_v46  ;;  %839 = vmatmul.mubr.bf16.gmra.mrb[28].mxu1 %v1588_v47 }
 0x102   : > { %v720_v50 = vpop.f32.mrb[0].mxu0  ;;  %v784_v51 = vpop.f32.mrb[0].mxu1 }
 0x103   : > { %v847_v54 = vadd.f32 %v720_v50, %v346_v48  ;;  %v863_v55 = vadd.f32 %v784_v51, %v362_v49  ;;  %v722_v56 = vpop.f32.mrb[1].mxu0  ;;  %v786_v57 = vpop.f32.mrb[1].mxu1 }
 0x104   : > { %v723_v58 = vpop.f32.mrb[2].mxu0  ;;  %v787_v59 = vpop.f32.mrb[2].mxu1 }
 0x105   : > { %880 = vst.msk [vmem:[#allocation2] sm:$0xff] %vm313_vm0, %v847_v54  ;;  %896 = vst.msk [vmem:[#allocation2 + $0x80] sm:$0xff] %vm313_vm0, %v863_v55  ;;  %v848_v60 = vadd.f32 %v723_v58, %v347_v52  ;;  %v864_v61 = vadd.f32 %v787_v59, %v363_v53  ;;  %v725_v62 = vpop.f32.mrb[3].mxu0  ;;  %v789_v63 = vpop.f32.mrb[3].mxu1 }
 0x107   : > { %881 = vst.msk [vmem:[#allocation2 + $0x8] sm:$0xff] %vm313_vm0, %v848_v60  ;;  %897 = vst.msk [vmem:[#allocation2 + $0x88] sm:$0xff] %vm313_vm0, %v864_v61 }
 0x10a   : > { %v728_v3 = vpop.f32.mrb[4].mxu0  ;;  %v792_v4 = vpop.f32.mrb[4].mxu1 }
 0x10b   : > { %v849_v7 = vadd.f32 %v728_v3, %v348_v0  ;;  %v865_v8 = vadd.f32 %v792_v4, %v364_v1  ;;  %v730_v9 = vpop.f32.mrb[5].mxu0  ;;  %v794_v10 = vpop.f32.mrb[5].mxu1 }
 0x10c   : > { %v915_v11 = vld [vmem:[#allocation2] sm:$0xff]  ;;  %v731_v14 = vpop.f32.mrb[6].mxu0  ;;  %v795_v15 = vpop.f32.mrb[6].mxu1  ;;  %v353_v9 = vld [vmem:[#allocation2 + $0x38] sm:$0xff] }
 0x10d   : > { %v931_v13 = vld [vmem:[#allocation2 + $0x80] sm:$0xff]  ;;  %v954_v16 = vmul.f32 %v1806_v2, %v915_v11  ;;  %882 = vst.msk [vmem:[#allocation2 + $0x10] sm:$0xff] %vm313_vm0, %v849_v7  ;;  %898 = vst.msk [vmem:[#allocation2 + $0x90] sm:$0xff] %vm313_vm0, %v865_v8  ;;  %v850_v18 = vadd.f32 %v731_v14, %v349_v5  ;;  %v866_v19 = vadd.f32 %v795_v15, %v365_v6  ;;  %v733_v20 = vpop.f32.mrb[7].mxu0  ;;  %v797_v21 = vpop.f32.mrb[7].mxu1  ;;  %v352_v5 = vld [vmem:[#allocation2 + $0x30] sm:$0xff] }
 0x10e   : > { %v970_v17 = vmul.f32 %v1806_v2, %v931_v13  ;;  %v916_v22 = vld [vmem:[#allocation2 + $0x8] sm:$0xff]  ;;  %v368_v6 = vld [vmem:[#allocation2 + $0xb0] sm:$0xff]  ;;  %v369_v10 = vld [vmem:[#allocation2 + $0xb8] sm:$0xff] }
 0x10f   : > { %v932_v23 = vld [vmem:[#allocation2 + $0x88] sm:$0xff]  ;;  %v993_v24 = vadd.f32 %v1811_v12, %v954_v16  ;;  %v955_v26 = vmul.f32 %v1806_v2, %v916_v22  ;;  %883 = vst.msk [vmem:[#allocation2 + $0x18] sm:$0xff] %vm313_vm0, %v850_v18  ;;  %899 = vst.msk [vmem:[#allocation2 + $0x98] sm:$0xff] %vm313_vm0, %v866_v19 }
 0x110   : > { %v1009_v25 = vadd.f32 %v1811_v12, %v970_v17  ;;  %v971_v27 = vmul.f32 %v1806_v2, %v932_v23 }
 0x111   : > { %v1025_v28 = vmax.f32 %v993_v24, 0.0  ;;  %v994_v30 = vadd.f32 %v1811_v12, %v955_v26 }
 0x112   : > { %v1041_v29 = vmax.f32 %v1009_v25, 0.0  ;;  %v1010_v31 = vadd.f32 %v1811_v12, %v971_v27  ;;  %v736_v34 = vpop.f32.mrb[8].mxu0  ;;  %v800_v35 = vpop.f32.mrb[8].mxu1 }
 0x113   : > { %v1452_v36 = vpack.c.bf16 %v1025_v28, %v1025_v28  ;;  %v1026_v38 = vmax.f32 %v994_v30, 0.0  ;;  %v738_v40 = vpop.f32.mrb[9].mxu0  ;;  %v802_v41 = vpop.f32.mrb[9].mxu1  ;;  %v851_v46 = vadd.f32 %v736_v34, %v350_v32  ;;  %v867_v47 = vadd.f32 %v800_v35, %v366_v33 }
 0x114   : > { %v1468_v37 = vpack.c.bf16 %v1041_v29, %v1041_v29  ;;  %v1042_v39 = vmax.f32 %v1010_v31, 0.0  ;;  %v917_v44 = vld [vmem:[#allocation2 + $0x10] sm:$0xff]  ;;  %v739_v48 = vpop.f32.mrb[10].mxu0  ;;  %v803_v49 = vpop.f32.mrb[10].mxu1 }
 0x115   : > { %v933_v45 = vld [vmem:[#allocation2 + $0x90] sm:$0xff]  ;;  %1186 = vst.msk [vmem:[%s1829_s28] sm:$0xf] %vm1185_vm4, %v1452_v36  ;;  %v1453_v50 = vpack.c.bf16 %v1026_v38, %v1026_v38  ;;  %v956_v52 = vmul.f32 %v1806_v2, %v917_v44  ;;  %v741_v54 = vpop.f32.mrb[11].mxu0  ;;  %v805_v55 = vpop.f32.mrb[11].mxu1  ;;  %v852_v58 = vadd.f32 %v739_v48, %v351_v42  ;;  %v868_v59 = vadd.f32 %v803_v49, %v367_v43  ;;  %v354_v38 = vld [vmem:[#allocation2 + $0x40] sm:$0xff] }
 0x116   : > { %1202 = vst.msk [vmem:[%s1829_s28 + $0x40] sm:$0xf] %vm1185_vm4, %v1468_v37  ;;  %v1469_v51 = vpack.c.bf16 %v1042_v39, %v1042_v39  ;;  %v972_v53 = vmul.f32 %v1806_v2, %v933_v45  ;;  %v918_v56 = vld [vmem:[#allocation2 + $0x18] sm:$0xff]  ;;  %v370_v39 = vld [vmem:[#allocation2 + $0xc0] sm:$0xff] }
 0x117   : > { %v934_v57 = vld [vmem:[#allocation2 + $0x98] sm:$0xff]  ;;  %884 = vst.msk [vmem:[#allocation2 + $0x20] sm:$0xff] %vm313_vm0, %v851_v46  ;;  %900 = vst.msk [vmem:[#allocation2 + $0xa0] sm:$0xff] %vm313_vm0, %v867_v47  ;;  %v995_v60 = vadd.f32 %v1811_v12, %v956_v52  ;;  %v957_v62 = vmul.f32 %v1806_v2, %v918_v56  ;;  %v355_v46 = vld [vmem:[#allocation2 + $0x48] sm:$0xff] }
 0x118   : > { %1187 = vst.msk [vmem:[%s1829_s28 + $0x4] sm:$0xf] %vm1185_vm4, %v1453_v50  ;;  %1203 = vst.msk [vmem:[%s1829_s28 + $0x44] sm:$0xf] %vm1185_vm4, %v1469_v51  ;;  %v1011_v61 = vadd.f32 %v1811_v12, %v972_v53  ;;  %v973_v63 = vmul.f32 %v1806_v2, %v934_v57  ;;  %v371_v47 = vld [vmem:[#allocation2 + $0xc8] sm:$0xff] }
 0x119   : > { %885 = vst.msk [vmem:[#allocation2 + $0x28] sm:$0xff] %vm313_vm0, %v852_v58  ;;  %901 = vst.msk [vmem:[#allocation2 + $0xa8] sm:$0xff] %vm313_vm0, %v868_v59  ;;  %v1027_v0 = vmax.f32 %v995_v60, 0.0  ;;  %v996_v3 = vadd.f32 %v1811_v12, %v957_v62 }
 0x11a   : > { %v1043_v1 = vmax.f32 %v1011_v61, 0.0  ;;  %v1012_v4 = vadd.f32 %v1811_v12, %v973_v63  ;;  %v744_v7 = vpop.f32.mrb[12].mxu0  ;;  %v808_v8 = vpop.f32.mrb[12].mxu1 }
 0x11b   : > { %v1454_v11 = vpack.c.bf16 %v1027_v0, %v1027_v0  ;;  %v1028_v14 = vmax.f32 %v996_v3, 0.0  ;;  %v746_v16 = vpop.f32.mrb[13].mxu0  ;;  %v810_v17 = vpop.f32.mrb[13].mxu1  ;;  %v853_v18 = vadd.f32 %v744_v7, %v352_v5  ;;  %v869_v19 = vadd.f32 %v808_v8, %v368_v6 }
 0x11c   : > { %v1470_v13 = vpack.c.bf16 %v1043_v1, %v1043_v1  ;;  %v1044_v15 = vmax.f32 %v1012_v4, 0.0  ;;  %v747_v20 = vpop.f32.mrb[14].mxu0  ;;  %v811_v21 = vpop.f32.mrb[14].mxu1 }
 0x11d   : > { %1188 = vst.msk [vmem:[%s1829_s28 + $0x8] sm:$0xf] %vm1185_vm4, %v1454_v11  ;;  %v1455_v22 = vpack.c.bf16 %v1028_v14, %v1028_v14  ;;  %v854_v26 = vadd.f32 %v747_v20, %v353_v9  ;;  %v870_v27 = vadd.f32 %v811_v21, %v369_v10  ;;  %v749_v28 = vpop.f32.mrb[15].mxu0  ;;  %v813_v29 = vpop.f32.mrb[15].mxu1  ;;  %v356_v11 = vld [vmem:[#allocation2 + $0x50] sm:$0xff] }
 0x11e   : > { %1204 = vst.msk [vmem:[%s1829_s28 + $0x48] sm:$0xf] %vm1185_vm4, %v1470_v13  ;;  %v1471_v23 = vpack.c.bf16 %v1044_v15, %v1044_v15  ;;  %v919_v24 = vld [vmem:[#allocation2 + $0x20] sm:$0xff]  ;;  %v372_v13 = vld [vmem:[#allocation2 + $0xd0] sm:$0xff] }
 0x11f   : > { %v935_v25 = vld [vmem:[#allocation2 + $0xa0] sm:$0xff]  ;;  %v958_v30 = vmul.f32 %v1806_v2, %v919_v24  ;;  %886 = vst.msk [vmem:[#allocation2 + $0x30] sm:$0xff] %vm313_vm0, %v853_v18  ;;  %902 = vst.msk [vmem:[#allocation2 + $0xb0] sm:$0xff] %vm313_vm0, %v869_v19 }
 0x120   : > { %v974_v31 = vmul.f32 %v1806_v2, %v935_v25  ;;  %1189 = vst.msk [vmem:[%s1829_s28 + $0xc] sm:$0xf] %vm1185_vm4, %v1455_v22  ;;  %1205 = vst.msk [vmem:[%s1829_s28 + $0x4c] sm:$0xf] %vm1185_vm4, %v1471_v23  ;;  %v920_v32 = vld [vmem:[#allocation2 + $0x28] sm:$0xff] }
 0x121   : > { %v936_v33 = vld [vmem:[#allocation2 + $0xa8] sm:$0xff]  ;;  %887 = vst.msk [vmem:[#allocation2 + $0x38] sm:$0xff] %vm313_vm0, %v854_v26  ;;  %903 = vst.msk [vmem:[#allocation2 + $0xb8] sm:$0xff] %vm313_vm0, %v870_v27  ;;  %v997_v34 = vadd.f32 %v1811_v12, %v958_v30  ;;  %v959_v36 = vmul.f32 %v1806_v2, %v920_v32  ;;  %v357_v26 = vld [vmem:[#allocation2 + $0x58] sm:$0xff] }
 0x122   : > { %v1013_v35 = vadd.f32 %v1811_v12, %v974_v31  ;;  %v975_v37 = vmul.f32 %v1806_v2, %v936_v33  ;;  %v752_v44 = vpop.f32.mrb[16].mxu0  ;;  %v816_v45 = vpop.f32.mrb[16].mxu1  ;;  %v373_v27 = vld [vmem:[#allocation2 + $0xd8] sm:$0xff] }
 0x123   : > { %v1029_v40 = vmax.f32 %v997_v34, 0.0  ;;  %v998_v42 = vadd.f32 %v1811_v12, %v959_v36  ;;  %v855_v48 = vadd.f32 %v752_v44, %v354_v38  ;;  %v871_v49 = vadd.f32 %v816_v45, %v370_v39  ;;  %v754_v50 = vpop.f32.mrb[17].mxu0  ;;  %v818_v51 = vpop.f32.mrb[17].mxu1 }
 0x124   : > { %v1045_v41 = vmax.f32 %v1013_v35, 0.0  ;;  %v1014_v43 = vadd.f32 %v1811_v12, %v975_v37  ;;  %v755_v56 = vpop.f32.mrb[18].mxu0  ;;  %v819_v57 = vpop.f32.mrb[18].mxu1 }
 0x125   : > { %v1456_v52 = vpack.c.bf16 %v1029_v40, %v1029_v40  ;;  %v1030_v54 = vmax.f32 %v998_v42, 0.0  ;;  %888 = vst.msk [vmem:[#allocation2 + $0x40] sm:$0xff] %vm313_vm0, %v855_v48  ;;  %904 = vst.msk [vmem:[#allocation2 + $0xc0] sm:$0xff] %vm313_vm0, %v871_v49  ;;  %v856_v60 = vadd.f32 %v755_v56, %v355_v46  ;;  %v872_v61 = vadd.f32 %v819_v57, %v371_v47  ;;  %v757_v62 = vpop.f32.mrb[19].mxu0  ;;  %v821_v63 = vpop.f32.mrb[19].mxu1 }
 0x126   : > { %v1472_v53 = vpack.c.bf16 %v1045_v41, %v1045_v41  ;;  %v1046_v55 = vmax.f32 %v1014_v43, 0.0  ;;  %v921_v58 = vld [vmem:[#allocation2 + $0x30] sm:$0xff]  ;;  %v359_v62 = vld [vmem:[#allocation2 + $0x68] sm:$0xff] }
 0x127   : > { %v937_v59 = vld [vmem:[#allocation2 + $0xb0] sm:$0xff]  ;;  %1190 = vst.msk [vmem:[%s1829_s28 + $0x10] sm:$0xf] %vm1185_vm4, %v1456_v52  ;;  %v1457_v0 = vpack.c.bf16 %v1030_v54, %v1030_v54  ;;  %v960_v3 = vmul.f32 %v1806_v2, %v921_v58  ;;  %v358_v52 = vld [vmem:[#allocation2 + $0x60] sm:$0xff]  ;;  %v375_v63 = vld [vmem:[#allocation2 + $0xe8] sm:$0xff] }
 0x128   : > { %1206 = vst.msk [vmem:[%s1829_s28 + $0x50] sm:$0xf] %vm1185_vm4, %v1472_v53  ;;  %v1473_v1 = vpack.c.bf16 %v1046_v55, %v1046_v55  ;;  %v976_v4 = vmul.f32 %v1806_v2, %v937_v59  ;;  %v922_v5 = vld [vmem:[#allocation2 + $0x38] sm:$0xff]  ;;  %v374_v53 = vld [vmem:[#allocation2 + $0xe0] sm:$0xff] }
 0x129   : > { %v938_v6 = vld [vmem:[#allocation2 + $0xb8] sm:$0xff]  ;;  %v961_v7 = vmul.f32 %v1806_v2, %v922_v5  ;;  %889 = vst.msk [vmem:[#allocation2 + $0x48] sm:$0xff] %vm313_vm0, %v856_v60  ;;  %905 = vst.msk [vmem:[#allocation2 + $0xc8] sm:$0xff] %vm313_vm0, %v872_v61  ;;  %v999_v9 = vadd.f32 %v1811_v12, %v960_v3 }
 0x12a   : > { %v977_v8 = vmul.f32 %v1806_v2, %v938_v6  ;;  %1191 = vst.msk [vmem:[%s1829_s28 + $0x14] sm:$0xf] %vm1185_vm4, %v1457_v0  ;;  %1207 = vst.msk [vmem:[%s1829_s28 + $0x54] sm:$0xf] %vm1185_vm4, %v1473_v1  ;;  %v1015_v10 = vadd.f32 %v1811_v12, %v976_v4  ;;  %v760_v18 = vpop.f32.mrb[20].mxu0  ;;  %v824_v19 = vpop.f32.mrb[20].mxu1 }
 0x12b   : > { %v1000_v14 = vadd.f32 %v1811_v12, %v961_v7  ;;  %v1031_v16 = vmax.f32 %v999_v9, 0.0  ;;  %v857_v22 = vadd.f32 %v760_v18, %v356_v11  ;;  %v873_v23 = vadd.f32 %v824_v19, %v372_v13  ;;  %v762_v24 = vpop.f32.mrb[21].mxu0  ;;  %v826_v25 = vpop.f32.mrb[21].mxu1 }
 0x12c   : > { %v1016_v15 = vadd.f32 %v1811_v12, %v977_v8  ;;  %v1047_v17 = vmax.f32 %v1015_v10, 0.0  ;;  %v923_v30 = vld [vmem:[#allocation2 + $0x40] sm:$0xff]  ;;  %v763_v32 = vpop.f32.mrb[22].mxu0  ;;  %v827_v33 = vpop.f32.mrb[22].mxu1 }
 0x12d   : > { %v1032_v20 = vmax.f32 %v1000_v14, 0.0  ;;  %v1458_v28 = vpack.c.bf16 %v1031_v16, %v1031_v16  ;;  %v939_v31 = vld [vmem:[#allocation2 + $0xc0] sm:$0xff]  ;;  %v962_v36 = vmul.f32 %v1806_v2, %v923_v30  ;;  %890 = vst.msk [vmem:[#allocation2 + $0x50] sm:$0xff] %vm313_vm0, %v857_v22  ;;  %906 = vst.msk [vmem:[#allocation2 + $0xd0] sm:$0xff] %vm313_vm0, %v873_v23  ;;  %v765_v38 = vpop.f32.mrb[23].mxu0  ;;  %v829_v39 = vpop.f32.mrb[23].mxu1  ;;  %v858_v42 = vadd.f32 %v763_v32, %v357_v26 }
 0x12e   : > { %v1048_v21 = vmax.f32 %v1016_v15, 0.0  ;;  %v1474_v29 = vpack.c.bf16 %v1047_v17, %v1047_v17  ;;  %v978_v37 = vmul.f32 %v1806_v2, %v939_v31  ;;  %v874_v43 = vadd.f32 %v827_v33, %v373_v27  ;;  %v360_v22 = vld [vmem:[#allocation2 + $0x70] sm:$0xff]  ;;  %v361_v30 = vld [vmem:[#allocation2 + $0x78] sm:$0xff] }
 0x12f   : > { %v1459_v34 = vpack.c.bf16 %v1032_v20, %v1032_v20  ;;  %1192 = vst.msk [vmem:[%s1829_s28 + $0x18] sm:$0xf] %vm1185_vm4, %v1458_v28  ;;  %v1001_v44 = vadd.f32 %v1811_v12, %v962_v36  ;;  %v376_v23 = vld [vmem:[#allocation2 + $0xf0] sm:$0xff]  ;;  %v377_v31 = vld [vmem:[#allocation2 + $0xf8] sm:$0xff] }
 0x130   : > { %v1475_v35 = vpack.c.bf16 %v1048_v21, %v1048_v21  ;;  %1208 = vst.msk [vmem:[%s1829_s28 + $0x58] sm:$0xf] %vm1185_vm4, %v1474_v29  ;;  %v924_v40 = vld [vmem:[#allocation2 + $0x48] sm:$0xff]  ;;  %v1017_v45 = vadd.f32 %v1811_v12, %v978_v37 }
 0x131   : > { %v940_v41 = vld [vmem:[#allocation2 + $0xc8] sm:$0xff]  ;;  %1193 = vst.msk [vmem:[%s1829_s28 + $0x1c] sm:$0xf] %vm1185_vm4, %v1459_v34  ;;  %v963_v46 = vmul.f32 %v1806_v2, %v924_v40  ;;  %v1033_v48 = vmax.f32 %v1001_v44, 0.0 }
 0x132   : > { %1209 = vst.msk [vmem:[%s1829_s28 + $0x5c] sm:$0xf] %vm1185_vm4, %v1475_v35  ;;  %v979_v47 = vmul.f32 %v1806_v2, %v940_v41  ;;  %v1049_v49 = vmax.f32 %v1017_v45, 0.0  ;;  %v768_v54 = vpop.f32.mrb[24].mxu0  ;;  %v832_v55 = vpop.f32.mrb[24].mxu1 }
 0x133   : > { %891 = vst.msk [vmem:[#allocation2 + $0x58] sm:$0xff] %vm313_vm0, %v858_v42  ;;  %907 = vst.msk [vmem:[#allocation2 + $0xd8] sm:$0xff] %vm313_vm0, %v874_v43  ;;  %v1002_v50 = vadd.f32 %v1811_v12, %v963_v46  ;;  %v1460_v56 = vpack.c.bf16 %v1033_v48, %v1033_v48  ;;  %v770_v60 = vpop.f32.mrb[25].mxu0  ;;  %v834_v61 = vpop.f32.mrb[25].mxu1  ;;  %v859_v3 = vadd.f32 %v768_v54, %v358_v52 }
 0x134   : > { %v1018_v51 = vadd.f32 %v1811_v12, %v979_v47  ;;  %v1476_v57 = vpack.c.bf16 %v1049_v49, %v1049_v49  ;;  %v925_v0 = vld [vmem:[#allocation2 + $0x50] sm:$0xff]  ;;  %v875_v4 = vadd.f32 %v832_v55, %v374_v53  ;;  %v771_v5 = vpop.f32.mrb[26].mxu0  ;;  %v835_v6 = vpop.f32.mrb[26].mxu1 }
 0x135   : > { %v1034_v58 = vmax.f32 %v1002_v50, 0.0  ;;  %v941_v1 = vld [vmem:[#allocation2 + $0xd0] sm:$0xff]  ;;  %1194 = vst.msk [vmem:[%s1829_s28 + $0x20] sm:$0xf] %vm1185_vm4, %v1460_v56  ;;  %v964_v9 = vmul.f32 %v1806_v2, %v925_v0  ;;  %v773_v11 = vpop.f32.mrb[27].mxu0  ;;  %v837_v13 = vpop.f32.mrb[27].mxu1  ;;  %v860_v14 = vadd.f32 %v771_v5, %v359_v62  ;;  %v876_v15 = vadd.f32 %v835_v6, %v375_v63 }
 0x136   : > { %v1050_v59 = vmax.f32 %v1018_v51, 0.0  ;;  %1210 = vst.msk [vmem:[%s1829_s28 + $0x60] sm:$0xf] %vm1185_vm4, %v1476_v57  ;;  %v980_v10 = vmul.f32 %v1806_v2, %v941_v1 }
 0x137   : > { %v1461_v7 = vpack.c.bf16 %v1034_v58, %v1034_v58  ;;  %892 = vst.msk [vmem:[#allocation2 + $0x60] sm:$0xff] %vm313_vm0, %v859_v3  ;;  %908 = vst.msk [vmem:[#allocation2 + $0xe0] sm:$0xff] %vm313_vm0, %v875_v4  ;;  %v1003_v16 = vadd.f32 %v1811_v12, %v964_v9 }
 0x138   : > { %v1477_v8 = vpack.c.bf16 %v1050_v59, %v1050_v59  ;;  %v1019_v17 = vadd.f32 %v1811_v12, %v980_v10  ;;  %893 = vst.msk [vmem:[#allocation2 + $0x68] sm:$0xff] %vm313_vm0, %v860_v14  ;;  %909 = vst.msk [vmem:[#allocation2 + $0xe8] sm:$0xff] %vm313_vm0, %v876_v15 }
 0x139   : > { %1195 = vst.msk [vmem:[%s1829_s28 + $0x24] sm:$0xf] %vm1185_vm4, %v1461_v7  ;;  %v1035_v24 = vmax.f32 %v1003_v16, 0.0 }
 0x13a   : > { %1211 = vst.msk [vmem:[%s1829_s28 + $0x64] sm:$0xf] %vm1185_vm4, %v1477_v8  ;;  %v926_v18 = vld [vmem:[#allocation2 + $0x58] sm:$0xff]  ;;  %v1051_v25 = vmax.f32 %v1019_v17, 0.0  ;;  %v776_v28 = vpop.f32.mrb[28].mxu0  ;;  %v840_v29 = vpop.f32.mrb[28].mxu1 }
 0x13b   : > { %v942_v19 = vld [vmem:[#allocation2 + $0xd8] sm:$0xff]  ;;  %v965_v20 = vmul.f32 %v1806_v2, %v926_v18  ;;  %v1462_v32 = vpack.c.bf16 %v1035_v24, %v1035_v24  ;;  %v861_v34 = vadd.f32 %v776_v28, %v360_v22  ;;  %v877_v35 = vadd.f32 %v840_v29, %v376_v23  ;;  %v778_v36 = vpop.f32.mrb[29].mxu0  ;;  %v842_v37 = vpop.f32.mrb[29].mxu1 }
 0x13c   : > { %v981_v21 = vmul.f32 %v1806_v2, %v942_v19  ;;  %v1478_v33 = vpack.c.bf16 %v1051_v25, %v1051_v25  ;;  %v779_v40 = vpop.f32.mrb[30].mxu0  ;;  %v843_v41 = vpop.f32.mrb[30].mxu1 }
 0x13d   : > { %v1004_v26 = vadd.f32 %v1811_v12, %v965_v20  ;;  %1196 = vst.msk [vmem:[%s1829_s28 + $0x28] sm:$0xf] %vm1185_vm4, %v1462_v32  ;;  %v862_v44 = vadd.f32 %v779_v40, %v361_v30  ;;  %v878_v45 = vadd.f32 %v843_v41, %v377_v31  ;;  %v781_v46 = vpop.f32.mrb[31].mxu0  ;;  %v845_v47 = vpop.f32.mrb[31].mxu1 }
 0x13e   : > { %v1020_v27 = vadd.f32 %v1811_v12, %v981_v21  ;;  %1212 = vst.msk [vmem:[%s1829_s28 + $0x68] sm:$0xf] %vm1185_vm4, %v1478_v33  ;;  %v927_v42 = vld [vmem:[#allocation2 + $0x60] sm:$0xff] }
 0x13f   : > { %v1036_v38 = vmax.f32 %v1004_v26, 0.0  ;;  %v943_v43 = vld [vmem:[#allocation2 + $0xe0] sm:$0xff]  ;;  %894 = vst.msk [vmem:[#allocation2 + $0x70] sm:$0xff] %vm313_vm0, %v861_v34  ;;  %910 = vst.msk [vmem:[#allocation2 + $0xf0] sm:$0xff] %vm313_vm0, %v877_v35  ;;  %v966_v50 = vmul.f32 %v1806_v2, %v927_v42  ;;  %v928_v52 = vld [vmem:[#allocation2 + $0x68] sm:$0xff] }
 0x140   : > { %v1052_v39 = vmax.f32 %v1020_v27, 0.0  ;;  %v982_v51 = vmul.f32 %v1806_v2, %v943_v43  ;;  %v944_v53 = vld [vmem:[#allocation2 + $0xe8] sm:$0xff]  ;;  %895 = vst.msk [vmem:[#allocation2 + $0x78] sm:$0xff] %vm313_vm0, %v862_v44  ;;  %911 = vst.msk [vmem:[#allocation2 + $0xf8] sm:$0xff] %vm313_vm0, %v878_v45  ;;  %v967_v56 = vmul.f32 %v1806_v2, %v928_v52 }
 0x141   : > { %v1463_v48 = vpack.c.bf16 %v1036_v38, %v1036_v38  ;;  %v1005_v54 = vadd.f32 %v1811_v12, %v966_v50  ;;  %v983_v57 = vmul.f32 %v1806_v2, %v944_v53 }
 0x142   : > { %v1479_v49 = vpack.c.bf16 %v1052_v39, %v1052_v39  ;;  %v1021_v55 = vadd.f32 %v1811_v12, %v982_v51  ;;  %v1006_v60 = vadd.f32 %v1811_v12, %v967_v56 }
 0x143   : > { %1197 = vst.msk [vmem:[%s1829_s28 + $0x2c] sm:$0xf] %vm1185_vm4, %v1463_v48  ;;  %v1037_v58 = vmax.f32 %v1005_v54, 0.0  ;;  %v1022_v61 = vadd.f32 %v1811_v12, %v983_v57 }
 0x144   : > { %1213 = vst.msk [vmem:[%s1829_s28 + $0x6c] sm:$0xf] %vm1185_vm4, %v1479_v49  ;;  %v1053_v59 = vmax.f32 %v1021_v55, 0.0  ;;  %v1038_v0 = vmax.f32 %v1006_v60, 0.0 }
 0x145   : > { %v1464_v62 = vpack.c.bf16 %v1037_v58, %v1037_v58  ;;  %v1054_v1 = vmax.f32 %v1022_v61, 0.0 }
 0x146   : > { %v1480_v63 = vpack.c.bf16 %v1053_v59, %v1053_v59  ;;  %v929_v3 = vld [vmem:[#allocation2 + $0x70] sm:$0xff]  ;;  %v1465_v7 = vpack.c.bf16 %v1038_v0, %v1038_v0 }
 0x147   : > { %v945_v4 = vld [vmem:[#allocation2 + $0xf0] sm:$0xff]  ;;  %v968_v5 = vmul.f32 %v1806_v2, %v929_v3  ;;  %1198 = vst.msk [vmem:[%s1829_s28 + $0x30] sm:$0xf] %vm1185_vm4, %v1464_v62  ;;  %v1481_v8 = vpack.c.bf16 %v1054_v1, %v1054_v1  ;;  %v930_v9 = vld [vmem:[#allocation2 + $0x78] sm:$0xff] }
 0x148   : > { %v984_v6 = vmul.f32 %v1806_v2, %v945_v4  ;;  %1214 = vst.msk [vmem:[%s1829_s28 + $0x70] sm:$0xf] %vm1185_vm4, %v1480_v63  ;;  %v946_v10 = vld [vmem:[#allocation2 + $0xf8] sm:$0xff]  ;;  %v969_v14 = vmul.f32 %v1806_v2, %v930_v9  ;;  %1199 = vst.msk [vmem:[%s1829_s28 + $0x34] sm:$0xf] %vm1185_vm4, %v1465_v7 }
 0x149   : > { %v1007_v11 = vadd.f32 %v1811_v12, %v968_v5  ;;  %v985_v15 = vmul.f32 %v1806_v2, %v946_v10  ;;  %1215 = vst.msk [vmem:[%s1829_s28 + $0x74] sm:$0xf] %vm1185_vm4, %v1481_v8 }
 0x14a   : > { %v1023_v13 = vadd.f32 %v1811_v12, %v984_v6  ;;  %v1008_v18 = vadd.f32 %v1811_v12, %v969_v14 }
 0x14b   : > { %v1039_v16 = vmax.f32 %v1007_v11, 0.0  ;;  %v1024_v19 = vadd.f32 %v1811_v12, %v985_v15 }
 0x14c   : > { %v1055_v17 = vmax.f32 %v1023_v13, 0.0  ;;  %v1040_v22 = vmax.f32 %v1008_v18, 0.0 }
 0x14d   : > { %v1466_v20 = vpack.c.bf16 %v1039_v16, %v1039_v16  ;;  %v1056_v23 = vmax.f32 %v1024_v19, 0.0 }
 0x14e   : > { %v1482_v21 = vpack.c.bf16 %v1055_v17, %v1055_v17  ;;  %v1467_v2 = vpack.c.bf16 %v1040_v22, %v1040_v22 }
 0x14f   : > { %1200 = vst.msk [vmem:[%s1829_s28 + $0x38] sm:$0xf] %vm1185_vm4, %v1466_v20  ;;  %v1483_v24 = vpack.c.bf16 %v1056_v23, %v1056_v23 }
 0x150   : > { %1216 = vst.msk [vmem:[%s1829_s28 + $0x78] sm:$0xf] %vm1185_vm4, %v1482_v21  ;;  %1201 = vst.msk [vmem:[%s1829_s28 + $0x3c] sm:$0xf] %vm1185_vm4, %v1467_v2 }
 0x151   : > { %1217 = vst.msk [vmem:[%s1829_s28 + $0x7c] sm:$0xf] %vm1185_vm4, %v1483_v24 }
 0x152 PF: > { %s14_s17 = sadd.s32 1, %s1611_s17   ;;  %s1989_s15 = smov %s1607_s16 }
 0x153   : > { %p11_p5 = scmp.ge.s32.totalorder %s14_s17, 4   ;;  %s1990_s16 = smov %s1992_s18 }
 0x155   :  { %13 = sbr.rel (!%p11_p5) target bundleno = 2 (0x2), region = 83 }

</bundles_post_ra>
